<compile_context>
chip_gen: v5e
topology: v5e:2x2
jax: 0.10.0
libtpu: 0.0.40
codegen_flags: <defaults>
</compile_context>

<pallas_src>
import functools

import jax
import jax.numpy as jnp
from jax.experimental import pallas as pl
from jax.experimental.pallas import tpu as pltpu

LANES = 128                     # lane width of a vreg
TILE_ROWS = 4096                # (4096, 128) f32 block = 2 MiB
FUSED_MAX_ROWS = 6144           # <= ~12 MiB f32 working set -> single resident kernel
VMEM_LIMIT = 32 * 1024 * 1024   # safe on v5e/v6e (128 MiB phys) and v7x (64 MiB phys)


# --------------------------------------------------------------------------------------
# Fused fast path: whole slab resident in VMEM, one HBM read + one HBM write.
# --------------------------------------------------------------------------------------
def _fused_kernel(x_ref, o_ref):
    x = x_ref[...].astype(jnp.float32)
    m = jnp.max(x)
    e = jnp.exp(x - m)
    inv = 1.0 / jnp.sum(e)                      # exact reciprocal, computed once
    o_ref[...] = (e * inv).astype(o_ref.dtype)


# --------------------------------------------------------------------------------------
# Tiled pass 1: online global max + sum(exp(x - max)), vector accumulators in VMEM
# scratch, final XLU reduction only on the last grid step.
# --------------------------------------------------------------------------------------
def _reduce_kernel(x_ref, m_ref, l_ref, m_vec, l_vec, *, tile_rows, total_rows):
    i = pl.program_id(0)
    nsteps = pl.num_programs(0)

    @pl.when(i == 0)
    def _():
        m_vec[...] = jnp.full_like(m_vec, -jnp.inf)
        l_vec[...] = jnp.zeros_like(l_vec)

    x = x_ref[...].astype(jnp.float32)          # f32 accumulation path (needed on v5e)

    # In-kernel masking of the ragged last tile (static row count, dynamic step id).
    # Only emitted when a ragged tail actually exists.
    if total_rows % tile_rows != 0:
        row_ids = jax.lax.broadcasted_iota(jnp.int32, x.shape, 0) + i * tile_rows
        x = jnp.where(row_ids < total_rows, x, -jnp.inf)

    # Per-(sublane, lane) online update — pure VPU work, no cross-lane reduce per step.
    x3 = x.reshape(tile_rows // 8, 8, LANES)
    m_old = m_vec[...]                                             # (8, 128)
    m_new = jnp.maximum(m_old, jnp.max(x3, axis=0))                # (8, 128)
    l_vec[...] = (l_vec[...] * jnp.exp(m_old - m_new)
                  + jnp.sum(jnp.exp(x3 - m_new[None]), axis=0))
    m_vec[...] = m_new

    # Deferred cross-lane/sublane reduction + scalar writeback, last step only.
    @pl.when(i == nsteps - 1)
    def _():
        mv = m_vec[...]
        m_fin = jnp.max(mv)                                        # scalar (XLU, once)
        l_fin = jnp.sum(l_vec[...] * jnp.exp(mv - m_fin))
        m_ref[...] = jnp.reshape(m_fin, (1, 1))
        l_ref[...] = jnp.reshape(l_fin, (1, 1))


# --------------------------------------------------------------------------------------
# Tiled pass 2: out = exp(x - m) * inv_l, m / inv_l fed as SMEM scalars.
# --------------------------------------------------------------------------------------
def _normalize_kernel(x_ref, m_ref, inv_l_ref, o_ref):
    x = x_ref[...].astype(jnp.float32)
    m = m_ref[0, 0]                              # SMEM scalar
    inv_l = inv_l_ref[0, 0]                      # SMEM scalar (exact reciprocal)
    o_ref[...] = (jnp.exp(x - m) * inv_l).astype(o_ref.dtype)


def stable_softmax(x):
    """Global softmax over all elements of x (any shape), matching exp(x)/exp(x).sum()."""
    orig_shape = x.shape
    n = int(x.size)
    dtype = x.dtype
    itemsize = x.dtype.itemsize

    # ---- lane-dense view: (rows, 128) ---------------------------------------------
    # Free metadata reshape when n % 128 == 0 (common case).  Only a ragged element
    # count forces a small -inf pad (exp(-inf)=0 never affects max or sum).
    pad = (-n) % LANES
    flat = x.reshape(-1)
    if pad:
        # TODO(synk): element-level in-kernel masking would avoid this copy for ragged n.
        flat = jnp.concatenate([flat, jnp.full((pad,), -jnp.inf, dtype=dtype)])
    rows = (n + pad) // LANES
    x2d = flat.reshape(rows, LANES)

    if rows <= FUSED_MAX_ROWS:
        # ---- fused VMEM-resident path: one kernel, 2N HBM traffic -------------------
        out2d = pl.pallas_call(
            _fused_kernel,
            out_shape=jax.ShapeDtypeStruct((rows, LANES), dtype),
            grid=(1,),
            in_specs=[pl.BlockSpec((rows, LANES), lambda i: (0, 0))],
            out_specs=pl.BlockSpec((rows, LANES), lambda i: (0, 0)),
            compiler_params=pltpu.CompilerParams(
                dimension_semantics=("arbitrary",),
                vmem_limit_bytes=VMEM_LIMIT),
            cost_estimate=pl.CostEstimate(
                flops=4 * n, transcendentals=n, bytes_accessed=2 * n * itemsize),
        )(x2d)
    else:
        # ---- two-pass tiled path -----------------------------------------------------
        tile_rows = TILE_ROWS
        grid = (pl.cdiv(rows, tile_rows),)
        x_spec = pl.BlockSpec((tile_rows, LANES), lambda i: (i, 0))
        out11 = pl.BlockSpec((1, 1), lambda i: (0, 0))
        smem_spec = pl.BlockSpec(memory_space=pltpu.MemorySpace.SMEM)

        # pass 1: online reduction (sequential accumulation -> "arbitrary")
        reduce_k = functools.partial(_reduce_kernel, tile_rows=tile_rows, total_rows=rows)
        m, l = pl.pallas_call(
            reduce_k,
            out_shape=(jax.ShapeDtypeStruct((1, 1), jnp.float32),
                       jax.ShapeDtypeStruct((1, 1), jnp.float32)),
            grid=grid,
            in_specs=[x_spec],
            out_specs=(out11, out11),
            scratch_shapes=[pltpu.VMEM((8, LANES), jnp.float32),
                            pltpu.VMEM((8, LANES), jnp.float32)],
            compiler_params=pltpu.CompilerParams(
                dimension_semantics=("arbitrary",),
                vmem_limit_bytes=VMEM_LIMIT),
            cost_estimate=pl.CostEstimate(
                flops=4 * n, transcendentals=n, bytes_accessed=n * itemsize),
        )(x2d)

        inv_l = 1.0 / l                       # exact reciprocal, computed once

        # pass 2: normalize (independent tiles -> "parallel", shards across v7x TCs)
        out2d = pl.pallas_call(
            _normalize_kernel,
            out_shape=jax.ShapeDtypeStruct((rows, LANES), dtype),
            grid=grid,
            in_specs=[x_spec, smem_spec, smem_spec],
            out_specs=x_spec,
            compiler_params=pltpu.CompilerParams(
                dimension_semantics=("parallel",),
                vmem_limit_bytes=VMEM_LIMIT),
            cost_estimate=pl.CostEstimate(
                flops=2 * n, transcendentals=n, bytes_accessed=2 * n * itemsize),
        )(x2d, m, inv_l)

    out_flat = out2d.reshape(-1)
    if pad:
        out_flat = out_flat[:n]
    return out_flat.reshape(orig_shape)


if __name__ == "__main__":
    key = jax.random.PRNGKey(0)
    k1, k2, k3 = jax.random.split(key, 3)

    def ref_softmax(v):
        e = jnp.exp(v - jnp.max(v))      # stable form of exp(v)/sum(exp(v)), same result
        return e / jnp.sum(e)

    # 1) module-sized NCHW input (2, 4, 16, 16) -> fused VMEM-resident path
    x_small = jax.random.normal(k1, (2, 4, 16, 16), dtype=jnp.float32) * 3.0
    out_small = jax.block_until_ready(stable_softmax(x_small))
    assert out_small.shape == x_small.shape
    assert jnp.allclose(out_small, ref_softmax(x_small), rtol=5e-4, atol=1e-8)
    assert jnp.allclose(jnp.sum(out_small), 1.0, atol=1e-3)

    # 2) ragged element count (n % 128 != 0) -> -inf padding branch, still fused
    x_ragged = jax.random.normal(k2, (5, 7, 11), dtype=jnp.float32)
    out_ragged = jax.block_until_ready(stable_softmax(x_ragged))
    assert out_ragged.shape == x_ragged.shape
    assert jnp.allclose(out_ragged, ref_softmax(x_ragged), rtol=5e-4, atol=1e-8)

    # 3) large input -> two-pass tiled path (3 grid steps, ragged last tile masked in-kernel)
    x_big = jax.random.normal(k3, (8300, 128), dtype=jnp.float32)
    out_big = jax.block_until_ready(stable_softmax(x_big))
    assert out_big.shape == x_big.shape
    assert jnp.allclose(out_big, ref_softmax(x_big), rtol=5e-4, atol=1e-8)
    assert jnp.allclose(jnp.sum(out_big), 1.0, atol=1e-3)

    print("KERNEL_OK")
</pallas_src>

<mosaic_0001>
module attributes {stable_mosaic.version = 11 : i64} {
  func.func @_fused_kernel(%arg0: i32, %arg1: memref<16x128xf32, #tpu.memory_space<vmem>>, %arg2: memref<16x128xf32, #tpu.memory_space<vmem>>) attributes {dimension_semantics = [#tpu.dimension_semantics<arbitrary>], iteration_bounds = array<i64: 1>, scalar_prefetch = 0 : i64, scratch_operands = 0 : i64, tpu.core_type = #tpu.core_type<tc>, window_params = [{pipeline_mode = #tpu.pipeline_mode<synchronous>, transform_indices = @transform_0, window_bounds = array<i64: 16, 128>}, {pipeline_mode = #tpu.pipeline_mode<synchronous>, transform_indices = @transform_1, window_bounds = array<i64: 16, 128>}]} {
    %c0 = arith.constant 0 : index
    %c0_0 = arith.constant 0 : index
    %0 = vector.load %arg1[%c0, %c0_0] : memref<16x128xf32, #tpu.memory_space<vmem>>, vector<16x128xf32>
    %1 = vector.shape_cast %0 : vector<16x128xf32> to vector<1x16x128xf32>
    %cst = arith.constant dense<0xFF800000> : vector<1xf32>
    %2 = vector.multi_reduction <maximumf>, %1, %cst [1, 2] : vector<1x16x128xf32> to vector<1xf32>
    %3 = vector.shape_cast %2 : vector<1xf32> to vector<1x1x1xf32>
    %4 = vector.extract %3[0, 0, 0] : f32 from vector<1x1x1xf32>
    %5 = vector.broadcast %4 : f32 to vector<16x128xf32>
    %6 = arith.subf %0, %5 : vector<16x128xf32>
    %7 = math.exp %6 : vector<16x128xf32>
    %8 = vector.shape_cast %7 : vector<16x128xf32> to vector<1x16x128xf32>
    %cst_1 = arith.constant dense<0.000000e+00> : vector<1xf32>
    %9 = vector.multi_reduction <add>, %8, %cst_1 [1, 2] : vector<1x16x128xf32> to vector<1xf32>
    %10 = vector.shape_cast %9 : vector<1xf32> to vector<1x1x1xf32>
    %11 = vector.extract %10[0, 0, 0] : f32 from vector<1x1x1xf32>
    %cst_2 = arith.constant 1.000000e+00 : f32
    %12 = arith.divf %cst_2, %11 : f32
    %13 = vector.broadcast %12 : f32 to vector<16x128xf32>
    %14 = arith.mulf %7, %13 : vector<16x128xf32>
    %c0_3 = arith.constant 0 : index
    %c0_4 = arith.constant 0 : index
    %15 = vector.load %arg2[%c0_3, %c0_4] : memref<16x128xf32, #tpu.memory_space<vmem>>, vector<16x128xf32>
    tpu.vector_store %arg2[%c0_3, %c0_4], %14 {strides = array<i32>} : memref<16x128xf32, #tpu.memory_space<vmem>>, vector<16x128xf32>,
    return
  }
  func.func @transform_0(%arg0: i32) -> (i32, i32) {
    %c0_i32 = arith.constant 0 : i32
    %c0_i32_0 = arith.constant 0 : i32
    %c0_i32_1 = arith.constant 0 : i32
    return %c0_i32, %c0_i32_0 : i32, i32
  }
  func.func @transform_1(%arg0: i32) -> (i32, i32) {
    %c0_i32 = arith.constant 0 : i32
    %c0_i32_0 = arith.constant 0 : i32
    %c0_i32_1 = arith.constant 0 : i32
    return %c0_i32, %c0_i32_0 : i32, i32
  }
}

</mosaic_0001>

<bundles_post_ra>
// kernel: tpu_custom_call.1
= control target key start
LH: loop header
LB: loop body
LE: loop exit
PB: predicated region body
PF: predicated region fallthrough
CT: control target
= control target key end

     0   :  { %6 = vsyncpa [#allocation3], 0  ;;  %s188_s0 = inlined_call_operand.hbm [shape: f32[16,128], index: 0, kind: input, shape index: {}]   ;;  %s189_s1 = inlined_call_operand.hbm [shape: f32[16,128], index: 1, kind: output, shape index: {}]  }
   0x1   :  { %7 = vsyncpa [#allocation4], 0  ;;  %s12_s8 = sshll.u32 %s188_s0, 4  ;;  %s162_s9 = smov [#allocation2]   ;;  %s13_s8 = int_to_ptr.hbm [resolvable:$true] %s12_s8 }
   0x2   :  { %s14_s10 = sshll.u32 %s162_s9, 4  ;;  %s163_s11 = smov 128   ;;  %s15_s10 = int_to_ptr.vmem [resolvable:$true] %s14_s10 }
   0x3   :  { %s164_s12 = smov 8  }
   0x4   :  { %20 = dma.hbm_to_vmem [thread:$0]  %s13_s8, 256, %s15_s10, [#allocation3], %s163_s11, %s163_s11, %s164_s12  }
   0x5   :  { %158 = dma.done.wait [#allocation3], 256  }
   0x6   :  { %159 = vsyncadd [#allocation3], 4294967040  ;;  %v25_v0 = vld [vmem:[#allocation2] sm:$0xff]  ;;  %v26_v1 = vld [vmem:[#allocation2 + $0x8] sm:$0xff]  ;;  %s165_s14 = smov [#allocation5]   ;;  %s81_s19 = sshll.u32 %s189_s1, 4  ;;  %s82_s19 = int_to_ptr.hbm [resolvable:$true] %s81_s19 }
   0x7   :  { %v27_v2 = vmax.f32 %v25_v0, %v26_v1  ;;  %s79_s15 = sshll.u32 %s165_s14, 4  ;;  %s80_s15 = int_to_ptr.vmem [resolvable:$true] %s79_s15 }
   0x9   :  { %28 = vmax.xlane.f32.xlu0 %v27_v2 }
  0x7c   :  { %v29_v3 = vpop.xlane.xlu0 %28 }
  0x7d   :  { %v30_v4 = vrot.slane %v29_v3, 4 }
  0x7f   :  { %v31_v5 = vmax.f32 %v29_v3, %v30_v4 }
  0x81   :  { %v32_v6 = vrot.slane %v31_v5, 2 }
  0x83   :  { %v33_v7 = vmax.f32 %v31_v5, %v32_v6 }
  0x85   :  { %v34_v8 = vrot.slane %v33_v7, 1 }
  0x87   :  { %v35_v9 = vmax.f32 %v33_v7, %v34_v8 }
  0x89   :  { %94 = vpush %v35_v9 }
  0xba   :  { %s95_s0 = spop %94 }
  0xbb   :  { %v37_v10 = vstv %s95_s0 }
  0xbc   :  { %v38_v11 = vsub.f32 %v25_v0, %v37_v10  ;;  %v39_v12 = vsub.f32 %v26_v1, %v37_v10 }
  0xbe   :  { %v40_v13 = vmul.f32 1.442695, %v38_v11  ;;  %v42_v14 = vmul.f32 1.442695, %v39_v12 }
  0xc0   :  { %104 = vpow2.f32 %v40_v13 }
  0xc1   :  { %106 = vpow2.f32 %v42_v14 }
  0xc6   :  { %v105_v15 = vpop.eup %104 }
  0xc7   :  { %v107_v16 = vpop.eup %106 }
  0xc8   :  { %v44_v17 = vadd.f32 %v107_v16, %v105_v15 }
  0xca   :  { %45 = vadd.xlane.f32.xlu0 %v44_v17 }
 0x13d   :  { %v46_v18 = vpop.xlane.xlu0 %45 }
 0x13e   :  { %v47_v19 = vrot.slane %v46_v18, 4 }
 0x140   :  { %v48_v20 = vadd.f32 %v47_v19, %v46_v18 }
 0x142   :  { %v49_v21 = vrot.slane %v48_v20, 2 }
 0x144   :  { %v50_v22 = vadd.f32 %v49_v21, %v48_v20 }
 0x146   :  { %v51_v23 = vrot.slane %v50_v22, 1 }
 0x148   :  { %v52_v24 = vadd.f32 %v51_v23, %v50_v22 }
 0x14a   :  { %96 = vpush %v52_v24 }
 0x17b   :  { %s97_s13 = spop %96 }
 0x17c   :  { %v54_v25 = vstv %s97_s13 }
 0x17d   :  { %108 = vrcp.f32 %v54_v25  ;;  %v66_v29 = vand.u32 2147483648, %v54_v25  ;;  %v64_v31 = vand.u32 2147483647, %v54_v25  ;;  %vm60_vm1 = vweird.f32 %v54_v25 }
 0x17f   :  { %v67_v33 = vor.u32 1.1754944e-38, %v66_v29  ;;  %vm65_vm3 = vcmp.eq.f32.partialorder %v64_v31, 8.507059e+37 }
 0x183   :  { %v109_v26 = vpop.eup %108 }
 0x184   :  { %v56_v27 = vmul.f32 %v109_v26, %v54_v25  ;;  %vm61_vm0 = vweird.f32 %v109_v26 }
 0x185   :  { %vm62_vm2 = vmor %vm60_vm1, %vm61_vm0 }
 0x186   :  { %v57_v28 = vsub.f32 1.0, %v56_v27 }
 0x188   :  { %v58_v30 = vmul.f32 %v109_v26, %v57_v28 }
 0x18a   :  { %v59_v32 = vadd.f32 %v109_v26, %v58_v30 }
 0x18c   :  { %v63_v34 = vsel %vm62_vm2, %v109_v26, %v59_v32 }
 0x18d   :  { %v68_v35 = vsel %vm65_vm3, %v67_v33, %v63_v34 }
 0x18e   :  { %98 = vpush %v68_v35 }
 0x1bf   :  { %s99_s16 = spop %98 }
 0x1c0   :  { %v70_v36 = vstv %s99_s16 }
 0x1c1   :  { %v71_v37 = vmul.f32 %v105_v15, %v70_v36  ;;  %v72_v38 = vmul.f32 %v107_v16, %v70_v36 }
 0x1c3   :  { %73 = vst [vmem:[#allocation5] sm:$0xff] %v71_v37 }
 0x1c4   :  { %74 = vst [vmem:[#allocation5 + $0x8] sm:$0xff] %v72_v38 }
 0x1c5   :  { %87 = dma.vmem_to_hbm [thread:$0]  %s80_s15, 256, %s82_s19, [#allocation4], %s163_s11, %s163_s11, %s164_s12  }
 0x1c6   :  { %160 = dma.done.wait [#allocation4], 256  }
 0x1c7   :  { %161 = vsyncadd [#allocation4], 4294967040 }
 0x1c8   :  { %92 = vsyncpa [#allocation3], 1 }
 0x1c9   :  { %93 = vsyncpa [#allocation4], 1 }

</bundles_post_ra>
